<compile_context>
chip_gen: v6e
topology: v6e:2x2x1
jax: 0.10.0
libtpu: 0.0.40
codegen_flags: <defaults>
</compile_context>

<pallas_src>
import functools

import jax
import jax.numpy as jnp
from jax.experimental import pallas as pl
from jax.experimental.pallas import tpu as pltpu


# ----------------------------------------------------------------------------- #
# helpers matching the PyTorch module's config math
# ----------------------------------------------------------------------------- #
def round_filters(channels, width_mult, divisor=8):
    c = channels * width_mult
    new_c = max(divisor, int(c + divisor / 2) // divisor * divisor)
    if new_c < 0.9 * c:
        new_c += divisor
    return int(new_c)


def same_pad(kernel_size, dilation=1):
    return ((kernel_size - 1) // 2) * dilation


def _row_tile(S, target=512):
    """Spatial-row tile for the pointwise matmuls: large (>=512 when possible),
    cdiv grid handles a ragged last tile (no whole-M fallback)."""
    if S <= target:
        return S
    return target


# ----------------------------------------------------------------------------- #
# Pallas kernels
# ----------------------------------------------------------------------------- #
def _expand_kernel(x_ref, w_ref, scale_ref, bias_ref, o_ref):
    """Expansion 1x1 conv (bf16 MXU matmul) + folded BN + SiLU, f32 accumulation."""
    x = x_ref[0].astype(jnp.bfloat16)                       # (ts, cin)
    y = jnp.dot(x, w_ref[...], preferred_element_type=jnp.float32)
    y = y * scale_ref[...] + bias_ref[...]                  # f32 epilogue
    y = y * jax.nn.sigmoid(y)                               # SiLU (sigmoid -> EUP)
    o_ref[0] = y.astype(o_ref.dtype)                        # bf16 intermediate


def _dw_kernel(x_ref, w_ref, scale_ref, bias_ref, o_ref, sum_ref, xpad_ref, *,
               K, stride, pad, H, W, Ho, Wo):
    """Depthwise KxK conv with in-kernel 'same' padding (VMEM scratch) and in-kernel
    stride (strided taps), + folded BN + SiLU. Also emits the per-image channel mean
    of the activated output (= the SE global average pool) so no extra HBM pass is
    needed for squeeze-excitation."""
    # TODO(synk): for very large spatial extents (e.g. 112x112 early stages on v7x)
    #             this whole-image block should be row-tiled with a (K-1)-row halo.
    C = o_ref.shape[-1]
    f32 = jnp.float32
    Hp, Wp = H + 2 * pad, W + 2 * pad

    # zero only the halo border of the scratch; the interior is fully overwritten
    # every grid step (keep it unconditional so megacore "parallel" sharding stays
    # correct: each core owns its own scratch).
    if pad > 0:
        zrow = jnp.zeros((pad, Wp, C), f32)
        xpad_ref[0:pad] = zrow
        xpad_ref[pad + H:Hp] = zrow
        zcol = jnp.zeros((H, pad, C), f32)
        xpad_ref[pad:pad + H, 0:pad] = zcol
        xpad_ref[pad:pad + H, pad + W:Wp] = zcol
    xpad_ref[pad:pad + H, pad:pad + W] = x_ref[0].astype(f32)

    acc = jnp.zeros((Ho, Wo, C), f32)
    for kh in range(K):                  # K is small & static -> fully unrolled taps
        for kw in range(K):
            if stride == 1:
                patch = xpad_ref[kh:kh + Ho, kw:kw + Wo, :]
            else:
                # strided output computed directly (no post-hoc HBM subsample)
                patch = xpad_ref[pl.ds(kh, Ho, stride), pl.ds(kw, Wo, stride), :]
            acc = acc + patch * w_ref[kh, kw, :]

    y = acc * scale_ref[0, 0] + bias_ref[0, 0]
    y = y * jax.nn.sigmoid(y)            # SiLU
    o_ref[0] = y.astype(o_ref.dtype)     # bf16 intermediate
    # per-image channel mean for squeeze-excitation (fused avg-pool)
    sum_ref[0, 0] = (jnp.sum(y, axis=(0, 1)) * (1.0 / (Ho * Wo))).astype(sum_ref.dtype)


def _se_fc_kernel(p_ref, w1_ref, b1_ref, w2_ref, b2_ref, o_ref):
    """SE squeeze/excite FCs for all N images at once: (N,C)@(C,Csq) -> SiLU ->
    (N,Csq)@(Csq,C) -> sigmoid gate."""
    p = p_ref[...].astype(jnp.float32)
    h = jnp.dot(p, w1_ref[...], preferred_element_type=jnp.float32) + b1_ref[...]
    h = h * jax.nn.sigmoid(h)            # SiLU
    s = jnp.dot(h, w2_ref[...], preferred_element_type=jnp.float32) + b2_ref[...]
    o_ref[...] = jax.nn.sigmoid(s).astype(o_ref.dtype)


def _project_kernel(x_ref, gate_ref, w_ref, scale_ref, bias_ref, o_ref):
    """SE gate (per-image broadcast) + projection 1x1 conv + folded BN (no act)."""
    xg = x_ref[0].astype(jnp.float32) * gate_ref[0]          # (ts, cexp) * (1, cexp)
    y = jnp.dot(xg.astype(jnp.bfloat16), w_ref[...],
                preferred_element_type=jnp.float32)
    y = y * scale_ref[...] + bias_ref[...]
    o_ref[0] = y.astype(o_ref.dtype)


def _project_res_kernel(x_ref, gate_ref, w_ref, scale_ref, bias_ref, res_ref, o_ref):
    """Same as _project_kernel with the residual add fused in-kernel."""
    xg = x_ref[0].astype(jnp.float32) * gate_ref[0]
    y = jnp.dot(xg.astype(jnp.bfloat16), w_ref[...],
                preferred_element_type=jnp.float32)
    y = y * scale_ref[...] + bias_ref[...]
    o_ref[0] = (y + res_ref[0].astype(jnp.float32)).astype(o_ref.dtype)


# ----------------------------------------------------------------------------- #
# kernel wrappers (pallas_call plumbing)
# ----------------------------------------------------------------------------- #
def pointwise_expand(x3, w, scale, bias, *, ts_target=512):
    N, S, cin = x3.shape
    cexp = w.shape[1]
    ts = _row_tile(S, ts_target)
    grid = (N, pl.cdiv(S, ts))
    return pl.pallas_call(
        _expand_kernel,
        grid=grid,
        in_specs=[
            pl.BlockSpec((1, ts, cin), lambda n, j: (n, j, 0)),
            pl.BlockSpec((cin, cexp), lambda n, j: (0, 0)),
            pl.BlockSpec((1, cexp), lambda n, j: (0, 0)),
            pl.BlockSpec((1, cexp), lambda n, j: (0, 0)),
        ],
        out_specs=pl.BlockSpec((1, ts, cexp), lambda n, j: (n, j, 0)),
        out_shape=jax.ShapeDtypeStruct((N, S, cexp), jnp.bfloat16),
        compiler_params=pltpu.CompilerParams(
            dimension_semantics=("parallel", "parallel")),
    )(x3, w.astype(jnp.bfloat16),
      scale.reshape(1, cexp).astype(jnp.float32),
      bias.reshape(1, cexp).astype(jnp.float32))


def depthwise_conv_bn_silu(x4, w_dw, scale, bias, *, K, stride):
    N, H, W, C = x4.shape
    p = same_pad(K)
    Ho = (H + 2 * p - K) // stride + 1
    Wo = (W + 2 * p - K) // stride + 1
    kern = functools.partial(_dw_kernel, K=K, stride=stride, pad=p,
                             H=H, W=W, Ho=Ho, Wo=Wo)
    y, pooled = pl.pallas_call(
        kern,
        grid=(N,),
        in_specs=[
            pl.BlockSpec((1, H, W, C), lambda n: (n, 0, 0, 0)),
            pl.BlockSpec((K, K, C), lambda n: (0, 0, 0)),
            pl.BlockSpec((1, 1, C), lambda n: (0, 0, 0)),
            pl.BlockSpec((1, 1, C), lambda n: (0, 0, 0)),
        ],
        out_specs=(
            pl.BlockSpec((1, Ho, Wo, C), lambda n: (n, 0, 0, 0)),
            pl.BlockSpec((1, 1, C), lambda n: (n, 0, 0)),
        ),
        out_shape=(
            jax.ShapeDtypeStruct((N, Ho, Wo, C), jnp.bfloat16),
            jax.ShapeDtypeStruct((N, 1, C), jnp.float32),
        ),
        scratch_shapes=[pltpu.VMEM((H + 2 * p, W + 2 * p, C), jnp.float32)],
        compiler_params=pltpu.CompilerParams(dimension_semantics=("parallel",)),
    )(x4, w_dw.astype(jnp.float32),
      scale.reshape(1, 1, C).astype(jnp.float32),
      bias.reshape(1, 1, C).astype(jnp.float32))
    return y, pooled


def se_gate(pooled, w1, b1, w2, b2):
    """One tiny (N, cexp) -> (N, cexp) SE FC kernel for all images at once.

    The squeeze dim is zero-padded to a multiple of 8 (exact: SiLU(0)==0 and the
    padded rows of w2 contribute nothing)."""
    N, cexp = pooled.shape
    csq = w1.shape[1]
    cp = max(8, -(-csq // 8) * 8)
    w1p = jnp.pad(w1, ((0, 0), (0, cp - csq))).astype(jnp.float32)
    b1p = jnp.pad(b1, (0, cp - csq)).reshape(1, cp).astype(jnp.float32)
    w2p = jnp.pad(w2, ((0, cp - csq), (0, 0))).astype(jnp.float32)
    b2p = b2.reshape(1, cexp).astype(jnp.float32)
    return pl.pallas_call(
        _se_fc_kernel,
        out_shape=jax.ShapeDtypeStruct((N, cexp), jnp.float32),
    )(pooled, w1p, b1p, w2p, b2p)


def pointwise_project(x3, gate3, w, scale, bias, *, residual=None,
                      out_dtype=jnp.float32, ts_target=512):
    N, S, cexp = x3.shape
    cout = w.shape[1]
    ts = _row_tile(S, ts_target)
    grid = (N, pl.cdiv(S, ts))
    x_spec = pl.BlockSpec((1, ts, cexp), lambda n, j: (n, j, 0))
    g_spec = pl.BlockSpec((1, 1, cexp), lambda n, j: (n, 0, 0))
    w_spec = pl.BlockSpec((cexp, cout), lambda n, j: (0, 0))
    v_spec = pl.BlockSpec((1, cout), lambda n, j: (0, 0))
    o_spec = pl.BlockSpec((1, ts, cout), lambda n, j: (n, j, 0))
    out_shape = jax.ShapeDtypeStruct((N, S, cout), out_dtype)
    cparams = pltpu.CompilerParams(dimension_semantics=("parallel", "parallel"))
    args = (x3, gate3, w.astype(jnp.bfloat16),
            scale.reshape(1, cout).astype(jnp.float32),
            bias.reshape(1, cout).astype(jnp.float32))
    # TODO(synk): for cout << 128 a lane-dense (padded-to-128) output store could be
    #             used; skipped here since it inflates HBM writeback at tiny cout.
    if residual is None:
        return pl.pallas_call(
            _project_kernel, grid=grid,
            in_specs=[x_spec, g_spec, w_spec, v_spec, v_spec],
            out_specs=o_spec, out_shape=out_shape,
            compiler_params=cparams,
        )(*args)
    r_spec = pl.BlockSpec((1, ts, residual.shape[-1]), lambda n, j: (n, j, 0))
    return pl.pallas_call(
        _project_res_kernel, grid=grid,
        in_specs=[x_spec, g_spec, w_spec, v_spec, v_spec, r_spec],
        out_specs=o_spec, out_shape=out_shape,
        compiler_params=cparams,
    )(*args, residual)


# ----------------------------------------------------------------------------- #
# parameter init (deterministic, synthetic) + full MBConv forward
# ----------------------------------------------------------------------------- #
def init_mbconv_params(key, cfg):
    cin, K = cfg["in_channels"], cfg["kernel"]
    cout = cfg["out_channels"]
    cexp = round_filters(cin, cfg["expand_ratio"])
    csq = max(1, cin // 4)
    ks = jax.random.split(key, 16)

    def bn(kg, kb, km, kv, c):
        gamma = 1.0 + 0.1 * jax.random.normal(kg, (c,), jnp.float32)
        beta = 0.1 * jax.random.normal(kb, (c,), jnp.float32)
        mean = 0.1 * jax.random.normal(km, (c,), jnp.float32)
        var = jnp.abs(jax.random.normal(kv, (c,), jnp.float32)) + 0.5
        scale = gamma * jax.lax.rsqrt(var + 1e-5)
        bias = beta - mean * scale
        return scale, bias

    params = {"expand": cexp != cin}
    if params["expand"]:
        params["w_exp"] = 0.2 * jax.random.normal(ks[0], (cin, cexp), jnp.float32)
        params["bn1"] = bn(ks[1], ks[2], ks[3], ks[4], cexp)
    params["w_dw"] = 0.2 * jax.random.normal(ks[5], (K, K, cexp), jnp.float32)
    params["bn2"] = bn(ks[6], ks[7], ks[8], ks[9], cexp)
    params["se_w1"] = 0.2 * jax.random.normal(ks[10], (cexp, csq), jnp.float32)
    params["se_b1"] = 0.1 * jax.random.normal(ks[11], (csq,), jnp.float32)
    params["se_w2"] = 0.2 * jax.random.normal(ks[12], (csq, cexp), jnp.float32)
    params["se_b2"] = 0.1 * jax.random.normal(ks[13], (cexp,), jnp.float32)
    params["w_proj"] = 0.2 * jax.random.normal(ks[14], (cexp, cout), jnp.float32)
    params["bn3"] = bn(*jax.random.split(ks[15], 4), cout)
    return params


def mbconv_forward(x_nchw, params, cfg):
    stride, K = cfg["stride"], cfg["kernel"]
    cin, cout = cfg["in_channels"], cfg["out_channels"]
    use_residual = (stride == 1) and (cin == cout)

    N, C, H, W = x_nchw.shape
    x = jnp.transpose(x_nchw, (0, 2, 3, 1))          # NCHW -> NHWC (once)
    x3 = x.reshape(N, H * W, cin)
    cexp = params["w_dw"].shape[-1]

    # 1) expansion 1x1 conv + BN + SiLU (skipped when exp_channels == in_channels)
    if params["expand"]:
        h3 = pointwise_expand(x3, params["w_exp"], *params["bn1"])
        h4 = h3.reshape(N, H, W, cexp)
    else:
        h4 = x

    # 2) depthwise KxK conv + BN + SiLU (padding & stride handled in-kernel),
    #    fused SE average pool as a second output
    h_dw, pooled = depthwise_conv_bn_silu(h4, params["w_dw"], *params["bn2"],
                                          K=K, stride=stride)
    Ho, Wo = h_dw.shape[1], h_dw.shape[2]

    # 3) squeeze-excitation FCs, once for all N images
    gate = se_gate(pooled.reshape(N, cexp), params["se_w1"], params["se_b1"],
                   params["se_w2"], params["se_b2"])

    # 4) projection 1x1 conv + BN (no act), SE gate + residual fused in-kernel.
    #    StochasticDepth is the identity in eval mode.
    h3p = h_dw.reshape(N, Ho * Wo, cexp)
    res3 = x3 if use_residual else None
    out3 = pointwise_project(h3p, gate.reshape(N, 1, cexp), params["w_proj"],
                             *params["bn3"], residual=res3,
                             out_dtype=x_nchw.dtype)

    out = out3.reshape(N, Ho, Wo, cout)
    return jnp.transpose(out, (0, 3, 1, 2))          # back to NCHW


# ----------------------------------------------------------------------------- #
# pure-JAX reference (independent of the kernels) for a sanity check
# ----------------------------------------------------------------------------- #
def ref_mbconv(x_nchw, params, cfg):
    silu = lambda v: v * jax.nn.sigmoid(v)
    stride, K = cfg["stride"], cfg["kernel"]
    cin, cout = cfg["in_channels"], cfg["out_channels"]
    use_residual = (stride == 1) and (cin == cout)
    x = jnp.transpose(x_nchw, (0, 2, 3, 1)).astype(jnp.float32)

    if params["expand"]:
        s1, b1 = params["bn1"]
        h = silu(jnp.einsum("nhwc,cd->nhwd", x, params["w_exp"]) * s1 + b1)
    else:
        h = x
    cexp = h.shape[-1]

    p = same_pad(K)
    w = params["w_dw"].reshape(K, K, 1, cexp)
    h = jax.lax.conv_general_dilated(
        h, w, window_strides=(stride, stride), padding=[(p, p), (p, p)],
        dimension_numbers=("NHWC", "HWIO", "NHWC"), feature_group_count=cexp)
    s2, b2 = params["bn2"]
    h = silu(h * s2 + b2)

    pooled = jnp.mean(h, axis=(1, 2))
    hh = silu(pooled @ params["se_w1"] + params["se_b1"])
    gate = jax.nn.sigmoid(hh @ params["se_w2"] + params["se_b2"])
    h = h * gate[:, None, None, :]

    s3, b3 = params["bn3"]
    out = jnp.einsum("nhwc,cd->nhwd", h, params["w_proj"]) * s3 + b3
    if use_residual:
        out = out + x
    return jnp.transpose(out, (0, 3, 1, 2))


# ----------------------------------------------------------------------------- #
if __name__ == "__main__":
    key = jax.random.PRNGKey(0)
    configs = [
        # residual path (stride 1, cin == cout), K=3
        dict(expand_ratio=4, kernel=3, stride=1, in_channels=8, out_channels=8,
             stochastic_depth_prob=0.1),
        # non-residual path, K=5
        dict(expand_ratio=4, kernel=5, stride=1, in_channels=8, out_channels=16,
             stochastic_depth_prob=0.1),
    ]
    N, H, W = 2, 16, 16

    for i, cfg in enumerate(configs):
        kx, kp, key = jax.random.split(key, 3)
        x = jax.random.normal(kx, (N, cfg["in_channels"], H, W), jnp.float32)
        params = init_mbconv_params(kp, cfg)

        out = jax.block_until_ready(mbconv_forward(x, params, cfg))
        ref = jax.block_until_ready(ref_mbconv(x, params, cfg))

        Ho = (H + 2 * same_pad(cfg["kernel"]) - cfg["kernel"]) // cfg["stride"] + 1
        assert out.shape == (N, cfg["out_channels"], Ho, Ho), out.shape
        # bf16 MXU operands + bf16 inter-stage activations vs. a pure-f32 reference.
        err = float(jnp.max(jnp.abs(out - ref)))
        assert err < 7e-2, f"config {i}: mismatch vs reference, max abs err = {err}"

    print("KERNEL_OK")
</pallas_src>

<mosaic_0001>
module attributes {stable_mosaic.version = 11 : i64} {
  func.func @_expand_kernel(%arg0: i32, %arg1: i32, %arg2: memref<1x256x8xf32, #tpu.memory_space<vmem>>, %arg3: memref<8x32xbf16, #tpu.memory_space<vmem>>, %arg4: memref<1x32xf32, #tpu.memory_space<vmem>>, %arg5: memref<1x32xf32, #tpu.memory_space<vmem>>, %arg6: memref<1x256x32xbf16, #tpu.memory_space<vmem>>) attributes {dimension_semantics = [#tpu.dimension_semantics<parallel>, #tpu.dimension_semantics<parallel>], iteration_bounds = array<i64: 2, 1>, scalar_prefetch = 0 : i64, scratch_operands = 0 : i64, tpu.core_type = #tpu.core_type<tc>, window_params = [{transform_indices = @transform_0, window_bounds = array<i64: 1, 256, 8>}, {pipeline_mode = #tpu.pipeline_mode<synchronous>, transform_indices = @transform_1, window_bounds = array<i64: 8, 32>}, {pipeline_mode = #tpu.pipeline_mode<synchronous>, transform_indices = @transform_2, window_bounds = array<i64: 1, 32>}, {pipeline_mode = #tpu.pipeline_mode<synchronous>, transform_indices = @transform_3, window_bounds = array<i64: 1, 32>}, {transform_indices = @transform_4, window_bounds = array<i64: 1, 256, 32>}]} {
    %c0 = arith.constant 0 : index
    %c0_0 = arith.constant 0 : index
    %c0_1 = arith.constant 0 : index
    %0 = vector.load %arg2[%c0, %c0_0, %c0_1] : memref<1x256x8xf32, #tpu.memory_space<vmem>>, vector<1x256x8xf32>
    %1 = vector.shape_cast %0 : vector<1x256x8xf32> to vector<256x8xf32>
    %2 = arith.truncf %1 : vector<256x8xf32> to vector<256x8xbf16>
    %c0_2 = arith.constant 0 : index
    %c0_3 = arith.constant 0 : index
    %3 = vector.load %arg3[%c0_2, %c0_3] : memref<8x32xbf16, #tpu.memory_space<vmem>>, vector<8x32xbf16>
    %cst = arith.constant dense<0.000000e+00> : vector<256x32xf32>
    %4 = tpu.matmul %2, %3, %cst {dimension_numbers = #tpu.dot_dimension_numbers<[1], [0], [0], [1], [0, 0, 1, 1], [], []>} : vector<256x8xbf16>, vector<8x32xbf16>, vector<256x32xf32> -> vector<256x32xf32>
    %c0_4 = arith.constant 0 : index
    %c0_5 = arith.constant 0 : index
    %5 = vector.load %arg4[%c0_4, %c0_5] : memref<1x32xf32, #tpu.memory_space<vmem>>, vector<1x32xf32>
    %6 = vector.broadcast %5 : vector<1x32xf32> to vector<256x32xf32>
    %7 = arith.mulf %4, %6 : vector<256x32xf32>
    %c0_6 = arith.constant 0 : index
    %c0_7 = arith.constant 0 : index
    %8 = vector.load %arg5[%c0_6, %c0_7] : memref<1x32xf32, #tpu.memory_space<vmem>>, vector<1x32xf32>
    %9 = vector.broadcast %8 : vector<1x32xf32> to vector<256x32xf32>
    %10 = arith.addf %7, %9 : vector<256x32xf32>
    %11 = arith.negf %10 : vector<256x32xf32>
    %12 = math.exp %11 : vector<256x32xf32>
    %cst_8 = arith.constant 1.000000e+00 : f32
    %13 = vector.broadcast %cst_8 : f32 to vector<256x32xf32>
    %14 = arith.addf %13, %12 : vector<256x32xf32>
    %15 = arith.divf %13, %14 : vector<256x32xf32>
    %16 = arith.mulf %10, %15 : vector<256x32xf32>
    %17 = arith.truncf %16 : vector<256x32xf32> to vector<256x32xbf16>
    %c0_9 = arith.constant 0 : index
    %c0_10 = arith.constant 0 : index
    %c0_11 = arith.constant 0 : index
    %18 = vector.load %arg6[%c0_9, %c0_10, %c0_11] : memref<1x256x32xbf16, #tpu.memory_space<vmem>>, vector<1x256x32xbf16>
    %19 = vector.shape_cast %18 : vector<1x256x32xbf16> to vector<256x32xbf16>
    %20 = vector.shape_cast %17 : vector<256x32xbf16> to vector<1x256x32xbf16>
    tpu.vector_store %arg6[%c0_9, %c0_10, %c0_11], %20 {strides = array<i32>} : memref<1x256x32xbf16, #tpu.memory_space<vmem>>, vector<1x256x32xbf16>,
    return
  }
  func.func @transform_0(%arg0: i32, %arg1: i32) -> (i32, i32, i32) {
    %c0_i32 = arith.constant 0 : i32
    %c0_i32_0 = arith.constant 0 : i32
    return %arg0, %arg1, %c0_i32 : i32, i32, i32
  }
  func.func @transform_1(%arg0: i32, %arg1: i32) -> (i32, i32) {
    %c0_i32 = arith.constant 0 : i32
    %c0_i32_0 = arith.constant 0 : i32
    %c0_i32_1 = arith.constant 0 : i32
    return %c0_i32, %c0_i32_0 : i32, i32
  }
  func.func @transform_2(%arg0: i32, %arg1: i32) -> (i32, i32) {
    %c0_i32 = arith.constant 0 : i32
    %c0_i32_0 = arith.constant 0 : i32
    %c0_i32_1 = arith.constant 0 : i32
    return %c0_i32, %c0_i32_0 : i32, i32
  }
  func.func @transform_3(%arg0: i32, %arg1: i32) -> (i32, i32) {
    %c0_i32 = arith.constant 0 : i32
    %c0_i32_0 = arith.constant 0 : i32
    %c0_i32_1 = arith.constant 0 : i32
    return %c0_i32, %c0_i32_0 : i32, i32
  }
  func.func @transform_4(%arg0: i32, %arg1: i32) -> (i32, i32, i32) {
    %c0_i32 = arith.constant 0 : i32
    %c0_i32_0 = arith.constant 0 : i32
    return %arg0, %arg1, %c0_i32 : i32, i32, i32
  }
}

</mosaic_0001>

<bundles_post_ra>
// kernel: tpu_custom_call.1
= control target key start
LH: loop header
LB: loop body
LE: loop exit
PB: predicated region body
PF: predicated region fallthrough
CT: control target
= control target key end

     0   :  { %s1434_s15 = smov 0   ;;  %s1436_s16 = smov 0   ;;  %s1813_s0 = inlined_call_operand.vmem [shape: f32[2,256,8], index: 0, kind: input, shape index: {}]   ;;  %s1814_s1 = inlined_call_operand.vmem [shape: bf16[8,32], index: 1, kind: input, shape index: {}]   ;;  %s1815_s2 = inlined_call_operand.vmem [shape: f32[1,32], index: 2, kind: input, shape index: {}]   ;;  %s1816_s3 = inlined_call_operand.vmem [shape: f32[1,32], index: 3, kind: input, shape index: {}]   ;;  %s1817_s4 = inlined_call_operand.vmem [shape: bf16[2,256,32], index: 4, kind: output, shape index: {}]  }
   0x1   :  { %s1438_s17 = smov 0  }
   0x2 LB: > { %s26_s18 = sadd.s32 1, %s1403_s16  ;;  %p1055_p0 = scmp.ge.s32.totalorder %s1407_s17, 1  ;;  %s1407_s17 = sphi %s1438_s17, %s14_s17   ;;  %s1403_s16 = sphi %s1436_s16, %s1819_s16   ;;  %s1399_s15 = sphi %s1434_s15, %s1818_s15  }
   0x3   : > { %p28_p1 = scmp.ge.s32.totalorder %s26_s18, 2  ;;  %p183_p2 = scmp.lt.s32.totalorder %s1407_s17, 3 }
   0x5   : > { %s1821_s18 = smov (%p28_p1, %s26_s18), 0  ;;  %p184_p3 = pnand %p1055_p0, %p183_p2 }
   0x6   : > { %p218_p4 = scmp.lt.s32.totalorder (!%p184_p3), %s1399_s15, 1 }
   0x7   : > { %187 = sbr.rel (%p184_p3) target bundleno = 300 (0x12c), region = 36 }
   0xc   : > { %v286_v0 = vld [vmem:[%s1814_s1] sm:$0xf]  ;;  %vm336_vm0 = vcmask 1043456   ;;  %s1823_s15 = smov (!%p218_p4, %s1399_s15), 1  ;;  %vm287_vm1 = vcmask 64512   ;;  %vm931_vm2 = vcmask 257024  }
   0xd   : > { %1231 = vmatprep.subr.msk.bf16.mxu0 %vm336_vm0, %v286_v0  ;;  %1232 = vmatprep.subr.msk.bf16.mxu1 %vm336_vm0, %v286_v0  ;;  %v338_v1 = vsel %vm336_vm0, %v286_v0, 0  ;;  %s1144_s21 = sshll.u32 %s1823_s15, 8  ;;  %v1514_v50 = vld [vmem:[%s1815_s2] ss:$0 sm:$0xff]  ;;  %s1145_s29 = sshll.u32 %s1823_s15, 7 }
   0xe   : > { %1196 = vmatpush3.bf16.msra.mxu0 %v338_v1  ;;  %1230 = vmatpush3.bf16.msra.mxu1 %v338_v1  ;;  %s1461_s24 = scalar_lea.vmem %s1813_s0, %s1144_s21  ;;  %v1519_v52 = vld [vmem:[%s1816_s3] ss:$0 sm:$0xff]  ;;  %s1674_s6 = scalar_lea.vmem %s1817_s4, %s1145_s29 }
   0xf   : > { %v238_v2 = vld [vmem:[%s1461_s24] sm:$0xff]  ;;  %v239_v3 = vld [vmem:[%s1461_s24 + $0x8] sm:$0xff]  ;;  %v240_v7 = vld [vmem:[%s1461_s24 + $0x10] sm:$0xff] }
  0x10   : > { %v254_v4 = vld [vmem:[%s1461_s24 + $0x80] sm:$0xff]  ;;  %v270_v5 = vpack.c.bf16 %v239_v3, %v238_v2  ;;  %v255_v6 = vld [vmem:[%s1461_s24 + $0x88] sm:$0xff]  ;;  %v241_v8 = vld [vmem:[%s1461_s24 + $0x18] sm:$0xff] }
  0x11   : > { %v278_v9 = vpack.c.bf16 %v255_v6, %v254_v4  ;;  %v271_v10 = vpack.c.bf16 %v241_v8, %v240_v7  ;;  %v256_v11 = vld [vmem:[%s1461_s24 + $0x90] sm:$0xff]  ;;  %v257_v12 = vld [vmem:[%s1461_s24 + $0x98] sm:$0xff]  ;;  %v242_v13 = vld [vmem:[%s1461_s24 + $0x20] sm:$0xff] }
  0x12   : > { %1197 = vmatprep.mubr.msk.bf16.mxu0 %vm287_vm1, %v270_v5  ;;  %v279_v14 = vpack.c.bf16 %v257_v12, %v256_v11  ;;  %v243_v15 = vld [vmem:[%s1461_s24 + $0x28] sm:$0xff]  ;;  %v258_v16 = vld [vmem:[%s1461_s24 + $0xa0] sm:$0xff]  ;;  %v244_v20 = vld [vmem:[%s1461_s24 + $0x30] sm:$0xff] }
  0x13   : > { %v259_v17 = vld [vmem:[%s1461_s24 + $0xa8] sm:$0xff]  ;;  %1213 = vmatprep.mubr.msk.bf16.mxu1 %vm287_vm1, %v278_v9  ;;  %1198 = vmatmul.mubr.msk.bf16.vlgmr.msra.gmra.mxu0 %vm287_vm1, %v271_v10  ;;  %v272_v18 = vpack.c.bf16 %v243_v15, %v242_v13  ;;  %v245_v21 = vld [vmem:[%s1461_s24 + $0x38] sm:$0xff]  ;;  %v260_v22 = vld [vmem:[%s1461_s24 + $0xb0] sm:$0xff] }
  0x14   : > { %v280_v19 = vpack.c.bf16 %v259_v17, %v258_v16  ;;  %1214 = vmatmul.mubr.msk.bf16.vlgmr.msra.gmra.mxu1 %vm287_vm1, %v279_v14  ;;  %v261_v23 = vld [vmem:[%s1461_s24 + $0xb8] sm:$0xff]  ;;  %v246_v24 = vld [vmem:[%s1461_s24 + $0x40] sm:$0xff]  ;;  %v247_v25 = vld [vmem:[%s1461_s24 + $0x48] sm:$0xff]  ;;  %v273_v28 = vpack.c.bf16 %v245_v21, %v244_v20 }
  0x15   : > { %1201 = vmatprep.mubr.msk.bf16.mxu0 %vm287_vm1, %v272_v18  ;;  %v262_v26 = vld [vmem:[%s1461_s24 + $0xc0] sm:$0xff]  ;;  %v263_v27 = vld [vmem:[%s1461_s24 + $0xc8] sm:$0xff]  ;;  %v281_v29 = vpack.c.bf16 %v261_v23, %v260_v22  ;;  %v274_v30 = vpack.c.bf16 %v247_v25, %v246_v24  ;;  %v248_v32 = vld [vmem:[%s1461_s24 + $0x50] sm:$0xff] }
  0x16   : > { %1217 = vmatprep.mubr.msk.bf16.mxu1 %vm287_vm1, %v280_v19  ;;  %v282_v31 = vpack.c.bf16 %v263_v27, %v262_v26  ;;  %v249_v33 = vld [vmem:[%s1461_s24 + $0x58] sm:$0xff]  ;;  %v264_v34 = vld [vmem:[%s1461_s24 + $0xd0] sm:$0xff]  ;;  %v250_v36 = vld [vmem:[%s1461_s24 + $0x60] sm:$0xff] }
  0x17   : > { %v265_v35 = vld [vmem:[%s1461_s24 + $0xd8] sm:$0xff]  ;;  %v251_v37 = vld [vmem:[%s1461_s24 + $0x68] sm:$0xff]  ;;  %v266_v38 = vld [vmem:[%s1461_s24 + $0xe0] sm:$0xff]  ;;  %v275_v40 = vpack.c.bf16 %v249_v33, %v248_v32 }
  0x18   : > { %v267_v39 = vld [vmem:[%s1461_s24 + $0xe8] sm:$0xff]  ;;  %v283_v41 = vpack.c.bf16 %v265_v35, %v264_v34  ;;  %v276_v42 = vpack.c.bf16 %v251_v37, %v250_v36  ;;  %v252_v44 = vld [vmem:[%s1461_s24 + $0x70] sm:$0xff]  ;;  %v253_v45 = vld [vmem:[%s1461_s24 + $0x78] sm:$0xff] }
  0x19   : > { %v284_v43 = vpack.c.bf16 %v267_v39, %v266_v38  ;;  %v268_v46 = vld [vmem:[%s1461_s24 + $0xf0] sm:$0xff]  ;;  %v269_v47 = vld [vmem:[%s1461_s24 + $0xf8] sm:$0xff]  ;;  %v277_v48 = vpack.c.bf16 %v253_v45, %v252_v44 }
  0x1a   : > { %v285_v49 = vpack.c.bf16 %v269_v47, %v268_v46 }
  0x1b   : > { %1202 = vmatmul.mubr.msk.bf16.gmra.mxu0 %vm287_vm1, %v273_v28 }
  0x1c   : > { %1218 = vmatmul.mubr.msk.bf16.gmra.mxu1 %vm287_vm1, %v281_v29  ;;  %1205 = vmatprep.mubr.msk.bf16.mxu0 %vm287_vm1, %v274_v30 }
  0x1d   : > { %1221 = vmatprep.mubr.msk.bf16.mxu1 %vm287_vm1, %v282_v31 }
  0x23   : > { %1206 = vmatmul.mubr.msk.bf16.gmra.mxu0 %vm287_vm1, %v275_v40 }
  0x24   : > { %1222 = vmatmul.mubr.msk.bf16.gmra.mxu1 %vm287_vm1, %v283_v41  ;;  %1209 = vmatprep.mubr.msk.bf16.mxu0 %vm287_vm1, %v276_v42 }
  0x25   : > { %1225 = vmatprep.mubr.msk.bf16.mxu1 %vm287_vm1, %v284_v43 }
  0x2b   : > { %1210 = vmatmul.mubr.msk.bf16.gmra.mxu0 %vm287_vm1, %v277_v48 }
  0x2c   : > { %1226 = vmatmul.mubr.msk.bf16.gmra.mxu1 %vm287_vm1, %v285_v49 }
  0xd3   : > { %v1199_v51 = vpop.f32.mrf.mxu0 }
  0xd4   : > { %v510_v53 = vmul.f32 %v1199_v51, %v1514_v50  ;;  %v1215_v54 = vpop.f32.mrf.mxu1 }
  0xd5   : > { %v526_v55 = vmul.f32 %v1215_v54, %v1514_v50  ;;  %v374_v56 = vpop.f32.mrf.mxu0 }
  0xd6   : > { %v1524_v57 = vadd.f32 %v1519_v52, %v510_v53  ;;  %v508_v58 = vmul.f32 %v1514_v50, %v374_v56  ;;  %v438_v59 = vpop.f32.mrf.mxu1 }
  0xd7   : > { %v1528_v60 = vadd.f32 %v1519_v52, %v526_v55  ;;  %v524_v61 = vmul.f32 %v1514_v50, %v438_v59  ;;  %v1200_v62 = vpop.f32.mrf.mxu0 }
  0xd8   : > { %v1080_v63 = vmul.f32 -1.442695, %v1524_v57  ;;  %v1533_v0 = vadd.f32 %v1519_v52, %v508_v58  ;;  %v511_v1 = vmul.f32 %v1200_v62, %v1514_v50  ;;  %v1216_v2 = vpop.f32.mrf.mxu1 }
  0xd9   : > { %v1096_v3 = vmul.f32 -1.442695, %v1528_v60  ;;  %v1538_v4 = vadd.f32 %v1519_v52, %v524_v61  ;;  %v527_v5 = vmul.f32 %v1216_v2, %v1514_v50  ;;  %v377_v6 = vpop.f32.mrf.mxu0 }
  0xda   : > { %1257 = vpow2.f32 %v1080_v63  ;;  %v1078_v7 = vmul.f32 -1.442695, %v1533_v0  ;;  %v1543_v8 = vadd.f32 %v1519_v52, %v511_v1  ;;  %v509_v9 = vmul.f32 %v1514_v50, %v377_v6  ;;  %v441_v10 = vpop.f32.mrf.mxu1 }
  0xdb   : > { %1259 = vpow2.f32 %v1096_v3  ;;  %v1094_v11 = vmul.f32 -1.442695, %v1538_v4  ;;  %v1548_v12 = vadd.f32 %v1519_v52, %v527_v5  ;;  %v525_v13 = vmul.f32 %v1514_v50, %v441_v10  ;;  %v1203_v14 = vpop.f32.mrf.mxu0 }
  0xdc   : > { %1261 = vpow2.f32 %v1078_v7  ;;  %v1081_v15 = vmul.f32 -1.442695, %v1543_v8  ;;  %v1553_v16 = vadd.f32 %v1519_v52, %v509_v9  ;;  %v514_v17 = vmul.f32 %v1203_v14, %v1514_v50  ;;  %v1219_v18 = vpop.f32.mrf.mxu1 }
  0xdd   : > { %1263 = vpow2.f32 %v1094_v11  ;;  %v1097_v19 = vmul.f32 -1.442695, %v1548_v12  ;;  %v1558_v20 = vadd.f32 %v1519_v52, %v525_v13  ;;  %v530_v21 = vmul.f32 %v1219_v18, %v1514_v50  ;;  %v390_v22 = vpop.f32.mrf.mxu0 }
  0xde   : > { %1265 = vpow2.f32 %v1081_v15  ;;  %v1079_v23 = vmul.f32 -1.442695, %v1553_v16  ;;  %v1563_v24 = vadd.f32 %v1519_v52, %v514_v17  ;;  %v512_v25 = vmul.f32 %v1514_v50, %v390_v22  ;;  %v454_v26 = vpop.f32.mrf.mxu1 }
  0xdf   : > { %1267 = vpow2.f32 %v1097_v19  ;;  %v1095_v27 = vmul.f32 -1.442695, %v1558_v20  ;;  %v1568_v28 = vadd.f32 %v1519_v52, %v530_v21  ;;  %v528_v29 = vmul.f32 %v1514_v50, %v454_v26  ;;  %v1204_v30 = vpop.f32.mrf.mxu0 }
  0xe0   : > { %1269 = vpow2.f32 %v1079_v23  ;;  %v1084_v31 = vmul.f32 -1.442695, %v1563_v24  ;;  %v1573_v32 = vadd.f32 %v1519_v52, %v512_v25  ;;  %v515_v33 = vmul.f32 %v1204_v30, %v1514_v50  ;;  %v1220_v34 = vpop.f32.mrf.mxu1 }
  0xe1   : > { %1271 = vpow2.f32 %v1095_v27  ;;  %v1100_v35 = vmul.f32 -1.442695, %v1568_v28  ;;  %v1578_v36 = vadd.f32 %v1519_v52, %v528_v29  ;;  %v531_v37 = vmul.f32 %v1220_v34, %v1514_v50  ;;  %v393_v38 = vpop.f32.mrf.mxu0 }
  0xe2   : > { %1273 = vpow2.f32 %v1084_v31  ;;  %v1082_v39 = vmul.f32 -1.442695, %v1573_v32  ;;  %v1583_v40 = vadd.f32 %v1519_v52, %v515_v33  ;;  %v513_v41 = vmul.f32 %v1514_v50, %v393_v38  ;;  %v457_v42 = vpop.f32.mrf.mxu1 }
  0xe3   : > { %1275 = vpow2.f32 %v1100_v35  ;;  %v1098_v43 = vmul.f32 -1.442695, %v1578_v36  ;;  %v1588_v44 = vadd.f32 %v1519_v52, %v531_v37  ;;  %v529_v45 = vmul.f32 %v1514_v50, %v457_v42  ;;  %v1207_v46 = vpop.f32.mrf.mxu0 }
  0xe4   : > { %1277 = vpow2.f32 %v1082_v39  ;;  %v1085_v47 = vmul.f32 -1.442695, %v1583_v40  ;;  %v1593_v48 = vadd.f32 %v1519_v52, %v513_v41  ;;  %v518_v49 = vmul.f32 %v1207_v46, %v1514_v50  ;;  %v1223_v51 = vpop.f32.mrf.mxu1 }
  0xe5   : > { %1279 = vpow2.f32 %v1098_v43  ;;  %v1101_v53 = vmul.f32 -1.442695, %v1588_v44  ;;  %v1598_v54 = vadd.f32 %v1519_v52, %v529_v45  ;;  %v534_v55 = vmul.f32 %v1223_v51, %v1514_v50  ;;  %v406_v56 = vpop.f32.mrf.mxu0 }
  0xe6   : > { %1281 = vpow2.f32 %v1085_v47  ;;  %v1083_v58 = vmul.f32 -1.442695, %v1593_v48  ;;  %v516_v59 = vmul.f32 %v1514_v50, %v406_v56  ;;  %v470_v61 = vpop.f32.mrf.mxu1  ;;  %v1606_v6 = vadd.f32 %v1519_v52, %v518_v49 }
  0xe7   : > { %v1258_v62 = vpop.eup %1257  ;;  %1283 = vpow2.f32 %v1101_v53  ;;  %v1099_v63 = vmul.f32 -1.442695, %v1598_v54  ;;  %v532_v1 = vmul.f32 %v1514_v50, %v470_v61  ;;  %v1208_v2 = vpop.f32.mrf.mxu0  ;;  %v1609_v11 = vadd.f32 %v1519_v52, %v534_v55 }
  0xe8   : > { %v1260_v3 = vpop.eup %1259  ;;  %v677_v5 = vadd.f32 1.0, %v1258_v62  ;;  %1285 = vpow2.f32 %v1083_v58  ;;  %v1224_v7 = vpop.f32.mrf.mxu1  ;;  %v1612_v17 = vadd.f32 %v1519_v52, %v516_v59  ;;  %v1618_v27 = vmul.f32 -1.442695, %v1606_v6 }
  0xe9   : > { %v1262_v9 = vpop.eup %1261  ;;  %v693_v10 = vadd.f32 1.0, %v1260_v3  ;;  %1287 = vpow2.f32 %v1099_v63  ;;  %v409_v13 = vpop.f32.mrf.mxu0  ;;  %v1615_v22 = vadd.f32 %v1519_v52, %v532_v1  ;;  %v519_v29 = vmul.f32 %v1208_v2, %v1514_v50 }
  0xea   : > { %v1264_v14 = vpop.eup %1263  ;;  %1289 = vrcp.f32 %v677_v5  ;;  %v675_v15 = vadd.f32 1.0, %v1262_v9  ;;  %v473_v18 = vpop.f32.mrf.mxu1  ;;  %v1622_v34 = vmul.f32 -1.442695, %v1609_v11  ;;  %v535_v35 = vmul.f32 %v1224_v7, %v1514_v50 }
  0xeb   : > { %v1266_v19 = vpop.eup %1265  ;;  %1291 = vrcp.f32 %v693_v10  ;;  %v691_v21 = vadd.f32 1.0, %v1264_v14  ;;  %v1211_v23 = vpop.f32.mrf.mxu0  ;;  %v1626_v39 = vmul.f32 -1.442695, %v1612_v17  ;;  %v517_v41 = vmul.f32 %v1514_v50, %v409_v13 }
  0xec   : > { %v1268_v25 = vpop.eup %1267  ;;  %1293 = vrcp.f32 %v675_v15  ;;  %v678_v26 = vadd.f32 1.0, %v1266_v19  ;;  %v1227_v30 = vpop.f32.mrf.mxu1  ;;  %v1630_v45 = vmul.f32 -1.442695, %v1615_v22  ;;  %v533_v46 = vmul.f32 %v1514_v50, %v473_v18 }
  0xed   : > { %v1270_v31 = vpop.eup %1269  ;;  %1295 = vrcp.f32 %v691_v21  ;;  %v694_v33 = vadd.f32 1.0, %v1268_v25  ;;  %v422_v47 = vpop.f32.mrf.mxu0  ;;  %v1634_v53 = vadd.f32 %v1519_v52, %v519_v29  ;;  %v522_v55 = vmul.f32 %v1211_v23, %v1514_v50 }
  0xee   : > { %v1272_v37 = vpop.eup %1271  ;;  %1297 = vrcp.f32 %v678_v26  ;;  %v676_v38 = vadd.f32 1.0, %v1270_v31  ;;  %v486_v56 = vpop.f32.mrf.mxu1  ;;  %v1638_v61 = vadd.f32 %v1519_v52, %v535_v35  ;;  %v538_v62 = vmul.f32 %v1227_v30, %v1514_v50 }
  0xef   : > { %v1274_v42 = vpop.eup %1273  ;;  %1299 = vrcp.f32 %v694_v33  ;;  %v692_v43 = vadd.f32 1.0, %v1272_v37  ;;  %v1642_v2 = vadd.f32 %v1519_v52, %v517_v41  ;;  %v520_v3 = vmul.f32 %v1514_v50, %v422_v47  ;;  %v1212_v26 = vpop.f32.mrf.mxu0 }
  0xf0   : > { %v1276_v49 = vpop.eup %1275  ;;  %1301 = vrcp.f32 %v676_v38  ;;  %v681_v51 = vadd.f32 1.0, %v1274_v42  ;;  %v1646_v9 = vadd.f32 %v1519_v52, %v533_v46  ;;  %v536_v10 = vmul.f32 %v1514_v50, %v486_v56  ;;  %v1228_v35 = vpop.f32.mrf.mxu1 }
  0xf1   : > { %v1278_v58 = vpop.eup %1277  ;;  %1303 = vrcp.f32 %v692_v43  ;;  %v697_v59 = vadd.f32 1.0, %v1276_v49  ;;  %v1650_v15 = vadd.f32 %v1519_v52, %v522_v55  ;;  %v1653_v18 = vadd.f32 %v1519_v52, %v538_v62 }
  0xf2   : > { %v1280_v63 = vpop.eup %1279  ;;  %1305 = vrcp.f32 %v681_v51  ;;  %v679_v1 = vadd.f32 1.0, %v1278_v58  ;;  %v1089_v23 = vmul.f32 -1.442695, %v1634_v53  ;;  %v1657_v25 = vadd.f32 %v1519_v52, %v520_v3  ;;  %v425_v58 = vpop.f32.mrf.mxu0 }
  0xf3   : > { %v1282_v5 = vpop.eup %1281  ;;  %1307 = vrcp.f32 %v697_v59  ;;  %v695_v7 = vadd.f32 1.0, %v1280_v63  ;;  %v1105_v31 = vmul.f32 -1.442695, %v1638_v61  ;;  %v1662_v33 = vadd.f32 %v1519_v52, %v536_v10  ;;  %v489_v3 = vpop.f32.mrf.mxu1 }
  0xf4   : > { %v1284_v13 = vpop.eup %1283  ;;  %1309 = vrcp.f32 %v679_v1  ;;  %v682_v14 = vadd.f32 1.0, %v1282_v5  ;;  %v1087_v41 = vmul.f32 -1.442695, %v1642_v2  ;;  %v1103_v42 = vmul.f32 -1.442695, %v1646_v9 }
  0xf5   : > { %v1286_v19 = vpop.eup %1285  ;;  %1311 = vrcp.f32 %v695_v7  ;;  %v698_v21 = vadd.f32 1.0, %v1284_v13  ;;  %v1092_v47 = vmul.f32 -1.442695, %v1650_v15  ;;  %v1669_v49 = vmul.f32 -1.442695, %v1653_v18 }
  0xf6   : > { %v1288_v29 = vpop.eup %1287  ;;  %1313 = vrcp.f32 %v682_v14  ;;  %v680_v30 = vadd.f32 1.0, %v1286_v19  ;;  %v1678_v56 = vmul.f32 -1.442695, %v1657_v25  ;;  %v1684_v1 = vmul.f32 -1.442695, %v1662_v33 }
  0xf7   : > { %v1290_v37 = vpop.eup %1289  ;;  %1315 = vrcp.f32 %v698_v21  ;;  %v696_v38 = vadd.f32 1.0, %v1288_v29  ;;  %v539_v10 = vmul.f32 %v1228_v35, %v1514_v50 }
  0xf8   : > { %v1292_v43 = vpop.eup %1291  ;;  %v773_v46 = vmul.f32 %v1290_v37, %v1524_v57  ;;  %1317 = vrcp.f32 %v680_v30  ;;  %v523_v57 = vmul.f32 %v1212_v26, %v1514_v50 }
  0xf9   : > { %v1294_v51 = vpop.eup %1293  ;;  %v789_v55 = vmul.f32 %v1292_v43, %v1528_v60  ;;  %1319 = vrcp.f32 %v696_v38 }
  0xfa   : > { %v1296_v59 = vpop.eup %1295  ;;  %v1148_v62 = vpack.c.bf16 %v773_v46, %v773_v46  ;;  %v771_v63 = vmul.f32 %v1294_v51, %v1533_v0  ;;  %1321 = vpow2.f32 %v1618_v27  ;;  %v521_v27 = vmul.f32 %v1514_v50, %v425_v58 }
  0xfb   : > { %v1298_v60 = vpop.eup %1297  ;;  %v1164_v5 = vpack.c.bf16 %v789_v55, %v789_v55  ;;  %v787_v7 = vmul.f32 %v1296_v59, %v1538_v4  ;;  %1323 = vpow2.f32 %v1622_v34  ;;  %v537_v34 = vmul.f32 %v1514_v50, %v489_v3 }
  0xfc   : > { %v1300_v13 = vpop.eup %1299  ;;  %934 = vst.msk [vmem:[%s1674_s6 + $0x8] sm:$0xf] %vm931_vm2, %v1148_v62  ;;  %v1146_v0 = vpack.c.bf16 %v771_v63, %v771_v63  ;;  %v774_v14 = vmul.f32 %v1298_v60, %v1543_v8  ;;  %1325 = vpow2.f32 %v1626_v39  ;;  %v1703_v39 = vadd.f32 %v1519_v52, %v523_v57 }
  0xfd   : > { %v1302_v19 = vpop.eup %1301  ;;  %950 = vst.msk [vmem:[%s1674_s6 + $0x48] sm:$0xf] %vm931_vm2, %v1164_v5  ;;  %v1162_v4 = vpack.c.bf16 %v787_v7, %v787_v7  ;;  %v790_v21 = vmul.f32 %v1300_v13, %v1548_v12  ;;  %1327 = vpow2.f32 %v1630_v45  ;;  %v1709_v50 = vadd.f32 %v1519_v52, %v539_v10 }
  0xfe   : > { %v1304_v26 = vpop.eup %1303  ;;  %932 = vst.msk [vmem:[%s1674_s6] sm:$0xf] %vm931_vm2, %v1146_v0  ;;  %v1149_v8 = vpack.c.bf16 %v774_v14, %v774_v14  ;;  %v772_v29 = vmul.f32 %v1302_v19, %v1553_v16  ;;  %1329 = vpow2.f32 %v1089_v23  ;;  %v1715_v37 = vadd.f32 %v1519_v52, %v521_v27 }
  0xff   : > { %v1306_v30 = vpop.eup %1305  ;;  %948 = vst.msk [vmem:[%s1674_s6 + $0x40] sm:$0xf] %vm931_vm2, %v1162_v4  ;;  %v1165_v12 = vpack.c.bf16 %v790_v21, %v790_v21  ;;  %v788_v35 = vmul.f32 %v1304_v26, %v1558_v20  ;;  %1331 = vpow2.f32 %v1105_v31  ;;  %v1721_v43 = vadd.f32 %v1519_v52, %v537_v34 }
 0x100   : > { %v1308_v45 = vpop.eup %1307  ;;  %935 = vst.msk [vmem:[%s1674_s6 + $0xc] sm:$0xf] %vm931_vm2, %v1149_v8  ;;  %v1147_v16 = vpack.c.bf16 %v772_v29, %v772_v29  ;;  %v777_v23 = vmul.f32 %v1306_v30, %v1563_v24  ;;  %1333 = vpow2.f32 %v1087_v41  ;;  %v1093_v51 = vmul.f32 -1.442695, %v1703_v39 }
 0x101   : > { %v1310_v38 = vpop.eup %1309  ;;  %951 = vst.msk [vmem:[%s1674_s6 + $0x4c] sm:$0xf] %vm931_vm2, %v1165_v12  ;;  %v1163_v20 = vpack.c.bf16 %v788_v35, %v788_v35  ;;  %v793_v31 = vmul.f32 %v1308_v45, %v1568_v28  ;;  %1335 = vpow2.f32 %v1103_v42  ;;  %v1109_v52 = vmul.f32 -1.442695, %v1709_v50 }
 0x102   : > { %v1312_v46 = vpop.eup %1311  ;;  %933 = vst.msk [vmem:[%s1674_s6 + $0x4] sm:$0xf] %vm931_vm2, %v1147_v16  ;;  %v1152_v24 = vpack.c.bf16 %v777_v23, %v777_v23  ;;  %v775_v41 = vmul.f32 %v1310_v38, %v1573_v32  ;;  %1337 = vpow2.f32 %v1092_v47  ;;  %v1091_v47 = vmul.f32 -1.442695, %v1715_v37 }
 0x103   : > { %v1314_v55 = vpop.eup %1313  ;;  %949 = vst.msk [vmem:[%s1674_s6 + $0x44] sm:$0xf] %vm931_vm2, %v1163_v20  ;;  %v1168_v57 = vpack.c.bf16 %v793_v31, %v793_v31  ;;  %v791_v28 = vmul.f32 %v1312_v46, %v1578_v36  ;;  %1339 = vpow2.f32 %v1669_v49  ;;  %v1107_v62 = vmul.f32 -1.442695, %v1721_v43 }
 0x104   : > { %v1316_v42 = vpop.eup %1315  ;;  %938 = vst.msk [vmem:[%s1674_s6 + $0x18] sm:$0xf] %vm931_vm2, %v1152_v24  ;;  %v1150_v58 = vpack.c.bf16 %v775_v41, %v775_v41  ;;  %v778_v32 = vmul.f32 %v1314_v55, %v1583_v40  ;;  %1341 = vpow2.f32 %v1678_v56 }
 0x105   : > { %v1318_v59 = vpop.eup %1317  ;;  %954 = vst.msk [vmem:[%s1674_s6 + $0x58] sm:$0xf] %vm931_vm2, %v1168_v57  ;;  %v1166_v36 = vpack.c.bf16 %v791_v28, %v791_v28  ;;  %v794_v49 = vmul.f32 %v1316_v42, %v1588_v44  ;;  %1343 = vpow2.f32 %v1684_v1 }
 0x106   : > { %v1320_v63 = vpop.eup %1319  ;;  %936 = vst.msk [vmem:[%s1674_s6 + $0x10] sm:$0xf] %vm931_vm2, %v1150_v58  ;;  %v1153_v40 = vpack.c.bf16 %v778_v32, %v778_v32  ;;  %v776_v56 = vmul.f32 %v1318_v59, %v1593_v48  ;;  %1345 = vpow2.f32 %v1093_v51 }
 0x107   : > { %v1322_v3 = vpop.eup %1321  ;;  %952 = vst.msk [vmem:[%s1674_s6 + $0x50] sm:$0xf] %vm931_vm2, %v1166_v36  ;;  %v1169_v60 = vpack.c.bf16 %v794_v49, %v794_v49  ;;  %v792_v5 = vmul.f32 %v1320_v63, %v1598_v54  ;;  %1347 = vpow2.f32 %v1109_v52 }
 0x108   : > { %v1324_v44 = vpop.eup %1323  ;;  %939 = vst.msk [vmem:[%s1674_s6 + $0x1c] sm:$0xf] %vm931_vm2, %v1153_v40  ;;  %v1151_v1 = vpack.c.bf16 %v776_v56, %v776_v56  ;;  %v685_v7 = vadd.f32 1.0, %v1322_v3  ;;  %1349 = vpow2.f32 %v1091_v47 }
 0x109   : > { %v1326_v10 = vpop.eup %1325  ;;  %955 = vst.msk [vmem:[%s1674_s6 + $0x5c] sm:$0xf] %vm931_vm2, %v1169_v60  ;;  %v1167_v48 = vpack.c.bf16 %v792_v5, %v792_v5  ;;  %v701_v13 = vadd.f32 1.0, %v1324_v44  ;;  %1351 = vpow2.f32 %v1107_v62 }
 0x10a   : > { %v1328_v0 = vpop.eup %1327  ;;  %937 = vst.msk [vmem:[%s1674_s6 + $0x14] sm:$0xf] %vm931_vm2, %v1151_v1  ;;  %1353 = vrcp.f32 %v685_v7  ;;  %v683_v14 = vadd.f32 1.0, %v1326_v10 }
 0x10b   : > { %v1330_v54 = vpop.eup %1329  ;;  %953 = vst.msk [vmem:[%s1674_s6 + $0x54] sm:$0xf] %vm931_vm2, %v1167_v48  ;;  %1355 = vrcp.f32 %v701_v13  ;;  %v699_v27 = vadd.f32 1.0, %v1328_v0 }
 0x10c   : > { %v1332_v19 = vpop.eup %1331  ;;  %1357 = vrcp.f32 %v683_v14  ;;  %v686_v4 = vadd.f32 1.0, %v1330_v54 }
 0x10d   : > { %v1334_v21 = vpop.eup %1333  ;;  %1359 = vrcp.f32 %v699_v27  ;;  %v702_v34 = vadd.f32 1.0, %v1332_v19 }
 0x10e   : > { %v1336_v26 = vpop.eup %1335  ;;  %1361 = vrcp.f32 %v686_v4  ;;  %v684_v8 = vadd.f32 1.0, %v1334_v21 }
 0x10f   : > { %v1338_v29 = vpop.eup %1337  ;;  %1363 = vrcp.f32 %v702_v34  ;;  %v700_v30 = vadd.f32 1.0, %v1336_v26 }
 0x110   : > { %v1340_v12 = vpop.eup %1339  ;;  %1365 = vrcp.f32 %v684_v8  ;;  %v689_v35 = vadd.f32 1.0, %v1338_v29 }
 0x111   : > { %v1342_v45 = vpop.eup %1341  ;;  %1367 = vrcp.f32 %v700_v30  ;;  %v705_v16 = vadd.f32 1.0, %v1340_v12 }
 0x112   : > { %v1344_v23 = vpop.eup %1343  ;;  %1369 = vrcp.f32 %v689_v35  ;;  %v687_v38 = vadd.f32 1.0, %v1342_v45 }
 0x113   : > { %v1346_v20 = vpop.eup %1345  ;;  %1371 = vrcp.f32 %v705_v16  ;;  %v703_v31 = vadd.f32 1.0, %v1344_v23 }
 0x114   : > { %v1348_v46 = vpop.eup %1347  ;;  %1373 = vrcp.f32 %v687_v38  ;;  %v690_v24 = vadd.f32 1.0, %v1346_v20 }
 0x115   : > { %v1350_v41 = vpop.eup %1349  ;;  %1375 = vrcp.f32 %v703_v31  ;;  %v706_v51 = vadd.f32 1.0, %v1348_v46 }
 0x116   : > { %v1352_v55 = vpop.eup %1351  ;;  %1377 = vrcp.f32 %v690_v24  ;;  %v688_v57 = vadd.f32 1.0, %v1350_v41 }
 0x117   : > { %v1354_v28 = vpop.eup %1353  ;;  %1379 = vrcp.f32 %v706_v51  ;;  %v704_v52 = vadd.f32 1.0, %v1352_v55 }
 0x118   : > { %v1356_v42 = vpop.eup %1355  ;;  %v781_v58 = vmul.f32 %v1354_v28, %v1606_v6  ;;  %1381 = vrcp.f32 %v688_v57 }
 0x119   : > { %v1358_v32 = vpop.eup %1357  ;;  %v797_v47 = vmul.f32 %v1356_v42, %v1609_v11  ;;  %1383 = vrcp.f32 %v704_v52 }
 0x11a   : > { %v1360_v59 = vpop.eup %1359  ;;  %v1156_v36 = vpack.c.bf16 %v781_v58, %v781_v58  ;;  %v779_v49 = vmul.f32 %v1358_v32, %v1612_v17 }
 0x11b   : > { %v1362_v62 = vpop.eup %1361  ;;  %v1172_v63 = vpack.c.bf16 %v797_v47, %v797_v47  ;;  %v795_v40 = vmul.f32 %v1360_v59, %v1615_v22 }
 0x11c   : > { %v1364_v56 = vpop.eup %1363  ;;  %942 = vst.msk [vmem:[%s1674_s6 + $0x28] sm:$0xf] %vm931_vm2, %v1156_v36  ;;  %v1154_v6 = vpack.c.bf16 %v779_v49, %v779_v49  ;;  %v782_v3 = vmul.f32 %v1362_v62, %v1634_v53 }
 0x11d   : > { %v1366_v60 = vpop.eup %1365  ;;  %958 = vst.msk [vmem:[%s1674_s6 + $0x68] sm:$0xf] %vm931_vm2, %v1172_v63  ;;  %v1170_v11 = vpack.c.bf16 %v795_v40, %v795_v40  ;;  %v798_v5 = vmul.f32 %v1364_v56, %v1638_v61 }
 0x11e   : > { %v1368_v17 = vpop.eup %1367  ;;  %940 = vst.msk [vmem:[%s1674_s6 + $0x20] sm:$0xf] %vm931_vm2, %v1154_v6  ;;  %v1157_v44 = vpack.c.bf16 %v782_v3, %v782_v3  ;;  %v780_v22 = vmul.f32 %v1366_v60, %v1642_v2 }
 0x11f   : > { %v1370_v1 = vpop.eup %1369  ;;  %956 = vst.msk [vmem:[%s1674_s6 + $0x60] sm:$0xf] %vm931_vm2, %v1170_v11  ;;  %v1173_v7 = vpack.c.bf16 %v798_v5, %v798_v5  ;;  %v796_v53 = vmul.f32 %v1368_v17, %v1646_v9 }
 0x120   : > { %v1372_v10 = vpop.eup %1371  ;;  %943 = vst.msk [vmem:[%s1674_s6 + $0x2c] sm:$0xf] %vm931_vm2, %v1157_v44  ;;  %v1155_v48 = vpack.c.bf16 %v780_v22, %v780_v22  ;;  %v785_v61 = vmul.f32 %v1370_v1, %v1650_v15 }
 0x121   : > { %v1374_v13 = vpop.eup %1373  ;;  %959 = vst.msk [vmem:[%s1674_s6 + $0x6c] sm:$0xf] %vm931_vm2, %v1173_v7  ;;  %v1171_v0 = vpack.c.bf16 %v796_v53, %v796_v53  ;;  %v801_v2 = vmul.f32 %v1372_v10, %v1653_v18 }
 0x122   : > { %v1376_v14 = vpop.eup %1375  ;;  %941 = vst.msk [vmem:[%s1674_s6 + $0x24] sm:$0xf] %vm931_vm2, %v1155_v48  ;;  %v1160_v54 = vpack.c.bf16 %v785_v61, %v785_v61  ;;  %v783_v9 = vmul.f32 %v1374_v13, %v1657_v25 }
 0x123   : > { %v1378_v27 = vpop.eup %1377  ;;  %957 = vst.msk [vmem:[%s1674_s6 + $0x64] sm:$0xf] %vm931_vm2, %v1171_v0  ;;  %v1176_v19 = vpack.c.bf16 %v801_v2, %v801_v2  ;;  %v799_v15 = vmul.f32 %v1376_v14, %v1662_v33 }
 0x124   : > { %v1380_v4 = vpop.eup %1379  ;;  %946 = vst.msk [vmem:[%s1674_s6 + $0x38] sm:$0xf] %vm931_vm2, %v1160_v54  ;;  %v1158_v18 = vpack.c.bf16 %v783_v9, %v783_v9  ;;  %v786_v21 = vmul.f32 %v1378_v27, %v1703_v39 }
 0x125   : > { %v1382_v34 = vpop.eup %1381  ;;  %962 = vst.msk [vmem:[%s1674_s6 + $0x78] sm:$0xf] %vm931_vm2, %v1176_v19  ;;  %v1174_v25 = vpack.c.bf16 %v799_v15, %v799_v15  ;;  %v802_v26 = vmul.f32 %v1380_v4, %v1709_v50 }
 0x126   : > { %v1384_v8 = vpop.eup %1383  ;;  %944 = vst.msk [vmem:[%s1674_s6 + $0x30] sm:$0xf] %vm931_vm2, %v1158_v18  ;;  %v1161_v33 = vpack.c.bf16 %v786_v21, %v786_v21  ;;  %v784_v29 = vmul.f32 %v1382_v34, %v1715_v37 }
 0x127   : > { %960 = vst.msk [vmem:[%s1674_s6 + $0x70] sm:$0xf] %vm931_vm2, %v1174_v25  ;;  %v1177_v30 = vpack.c.bf16 %v802_v26, %v802_v26  ;;  %v800_v12 = vmul.f32 %v1384_v8, %v1721_v43 }
 0x128   : > { %947 = vst.msk [vmem:[%s1674_s6 + $0x3c] sm:$0xf] %vm931_vm2, %v1161_v33  ;;  %v1159_v39 = vpack.c.bf16 %v784_v29, %v784_v29 }
 0x129   : > { %963 = vst.msk [vmem:[%s1674_s6 + $0x7c] sm:$0xf] %vm931_vm2, %v1177_v30  ;;  %v1175_v35 = vpack.c.bf16 %v800_v12, %v800_v12 }
 0x12a   : > { %945 = vst.msk [vmem:[%s1674_s6 + $0x34] sm:$0xf] %vm931_vm2, %v1159_v39 }
 0x12b   : > { %961 = vst.msk [vmem:[%s1674_s6 + $0x74] sm:$0xf] %vm931_vm2, %v1175_v35 }
 0x12c PF: > { %s14_s17 = sadd.s32 1, %s1407_s17   ;;  %s1818_s15 = smov %s1403_s16 }
 0x12d   : > { %p11_p5 = scmp.ge.s32.totalorder %s14_s17, 4   ;;  %s1819_s16 = smov %s1821_s18 }
 0x12f   :  { %13 = sbr.rel (!%p11_p5) target bundleno = 2 (0x2), region = 66 }

</bundles_post_ra>
